<compile_context>
chip_gen: v7x
topology: tpu7x:2x2x1
jax: 0.10.0
libtpu: 0.0.40
codegen_flags: <defaults>
</compile_context>

<pallas_src>
import functools

import numpy as np
import jax
import jax.numpy as jnp
from jax import lax
from jax.experimental import pallas as pl
from jax.experimental.pallas import tpu as pltpu

# 'highest' only affects the host-side weight-fusion einsums and the XLA reference; the
# in-kernel dots take native bf16 operands and explicitly use Precision.DEFAULT.
jax.config.update("jax_default_matmul_precision", "highest")


# --------------------------------------------------------------------------------------
# Pallas kernel: full stblock forward for Bblk batch elements, lane layout = n*C + c.
# --------------------------------------------------------------------------------------
def _stblock_kernel(kt, Bblk, T2, L2,
                    x_ref,        # [Bblk, T1, kt*N*c0]  bf16 (host-side im2col)
                    w1_ref,       # [kt*N*c0, 2*N*c1]    bf16 (GLU a|b fused, resid folded)
                    ms_ref,       # [N*c1, N*c1]         bf16 (graph-shift o grouped-linear)
                    w2_ref,       # [kt*N*c1, L2pad]     bf16 (resid folded, cols zero-padded)
                    vec_ref,      # [8, VW]              f32  (b1a|b1b|bg|b2|gamma|beta)
                    out_ref):     # [Bblk*T2, L2pad]     f32
    bf16, f32 = jnp.bfloat16, jnp.float32
    T1 = x_ref.shape[1]
    KT0 = x_ref.shape[2]
    L1 = ms_ref.shape[0]
    L2p = w2_ref.shape[1]
    M2 = Bblk * T2
    prec = lax.Precision.DEFAULT        # operands already bf16 -> single MXU pass

    # packed per-lane vectors (f32)
    b1a = vec_ref[0:1, :L1]
    b1b = vec_ref[1:2, :L1]
    bg = vec_ref[2:3, :L1]
    b2 = vec_ref[3:4, :L2p]
    gamma = vec_ref[4:5, :L2p]
    beta = vec_ref[5:6, :L2p]

    # ---- tlayer 1: im2col'd temporal conv (+folded residual) in ONE matmul, then GLU ----
    if Bblk == 1:
        x2d = x_ref[0]                                    # [T1, KT0] bf16
    else:
        x2d = x_ref[...].reshape(Bblk * T1, KT0)
    y1 = jnp.dot(x2d, w1_ref[...], precision=prec, preferred_element_type=f32)
    ya = y1[:, :L1] + b1a
    yb = y1[:, L1:] + b1b
    gate = 0.5 * (jnp.tanh(0.5 * yb) + 1.0)               # sigmoid via a single EUP tanh
    h1 = ya * gate                                        # [M1, L1] f32

    # ---- slayer: graph-shift o grouped-linear fused into ONE matmul + identity residual ----
    h2 = jnp.dot(h1.astype(bf16), ms_ref[...], precision=prec, preferred_element_type=f32)
    h2 = jnp.maximum(h2 + bg + h1, 0.0)                   # [M1, L1] f32

    # ---- tlayer 2: lane-concat the kt time taps -> ONE matmul (+folded residual), ReLU ----
    if Bblk == 1:
        taps = [h2[dt:dt + T2, :] for dt in range(kt)]
    else:
        h2b = h2.reshape(Bblk, T1, L1)
        taps = [h2b[:, dt:dt + T2, :].reshape(M2, L1) for dt in range(kt)]
    h2cat = jnp.concatenate(taps, axis=-1).astype(bf16)   # [M2, kt*L1], 128-aligned offsets
    y2 = jnp.dot(h2cat, w2_ref[...], precision=prec, preferred_element_type=f32)
    h3 = jnp.maximum(y2 + b2, 0.0)                        # [M2, L2p]; lanes >= L2 stay 0

    # ---- ln over (channel, node) lanes, per (batch, time) row (torch unbiased std + eps) ----
    mean = jnp.sum(h3, axis=1, keepdims=True) * (1.0 / L2)            # pad lanes contribute 0
    sq = jnp.sum(h3 * h3, axis=1, keepdims=True)
    var = jnp.maximum(sq - L2 * mean * mean, 0.0) * (1.0 / (L2 - 1))  # == sum((x-mean)^2)/(L2-1)
    inv = pl.reciprocal(jnp.sqrt(var) + 1e-6, approx=True)            # EUP
    out_ref[...] = (h3 - mean) * inv * gamma + beta       # pad lanes: (0-m)*inv*0 + 0 = 0


# --------------------------------------------------------------------------------------
# Host-side parameter fusion helpers (plain JAX glue).
# --------------------------------------------------------------------------------------
def _residual_proj(cin, cout, lin_w=None, lin_b=None):
    """tlayer residual branch as a [cin, cout] projection + bias [cout]."""
    if cin > cout:                                    # 1x1 Conv2d residual
        return jnp.transpose(lin_w[:, :, 0, 0]), lin_b
    # identity (cin == cout) or zero channel-pad (cin < cout)
    return jnp.eye(cin, cout, dtype=jnp.float32), jnp.zeros((cout,), jnp.float32)


def _node_blockdiag(w, n):
    """w: [kt, cin, cout] -> [kt, n*cin, n*cout], block-diagonal over nodes (kron(I_n, w))."""
    kt, cin, cout = w.shape
    eye = jnp.eye(n, dtype=w.dtype)
    return jnp.einsum("mn,tio->tmino", eye, w).reshape(kt, n * cin, n * cout)


def init_params(key, nodes, ks, kt, channels):
    """Deterministic synthetic parameters in PyTorch layouts."""
    c0, c1, c2 = channels
    keys = jax.random.split(key, 12)

    def nrm(k, shape, scale=0.1):
        return scale * jax.random.normal(k, shape, jnp.float32)

    params = {
        "w_t1": nrm(keys[0], (2 * c1, c0, kt, 1)),        # Conv2d(c0, 2*c1, (kt,1))
        "b_t1": nrm(keys[1], (2 * c1,)),
        "Llist": nrm(keys[2], (nodes, ks * nodes), 0.2),  # graph shift operators
        "w_g": nrm(keys[3], (c1, c1 * ks)),               # Linear(c1*ks, c1)
        "b_g": nrm(keys[4], (c1,)),
        "w_t2": nrm(keys[5], (c2, c1, kt, 1)),            # Conv2d(c1, c2, (kt,1))
        "b_t2": nrm(keys[6], (c2,)),
        "gamma": 1.0 + nrm(keys[7], (1, c2, 1, nodes)),   # ln params [1, C, 1, N]
        "beta": nrm(keys[8], (1, c2, 1, nodes)),
    }
    if c0 > c1:                                           # tconv1 1x1 residual conv
        params["lin_t1_w"] = nrm(keys[9], (c1, c0, 1, 1))
        params["lin_t1_b"] = nrm(keys[10], (c1,))
    if c1 > c2:                                           # tconv2 1x1 residual conv
        params["lin_t2_w"] = nrm(keys[9], (c2, c1, 1, 1))
        params["lin_t2_b"] = nrm(keys[11], (c2,))
    return params


# --------------------------------------------------------------------------------------
# Wrapper: NCHW in, (NCHW, [B, N]) out — matches the PyTorch module semantics.
# --------------------------------------------------------------------------------------
def stblock_pallas(x_nchw, params, *, kt, ks, channels):
    c0, c1, c2 = channels
    B, cin, T, N = x_nchw.shape
    assert cin == c0
    T1 = T - kt + 1
    T2 = T1 - kt + 1
    L0, L1, L2 = N * c0, N * c1, N * c2
    L2p = max(128, ((L2 + 127) // 128) * 128)         # lane-dense padded output width
    f32, bf16 = jnp.float32, jnp.bfloat16

    # ---- tconv1 (GLU): residual folded into last tap, taps flattened for im2col ----
    w_t1 = params["w_t1"][:, :, :, 0]                              # [2c1, c0, kt]
    w1a = jnp.transpose(w_t1[:c1], (2, 1, 0))                      # [kt, c0, c1]
    w1b = jnp.transpose(w_t1[c1:], (2, 1, 0))
    r1, rb1 = _residual_proj(c0, c1, params.get("lin_t1_w"), params.get("lin_t1_b"))
    w1a = w1a.at[kt - 1].add(r1)
    W1 = jnp.concatenate([_node_blockdiag(w1a, N),
                          _node_blockdiag(w1b, N)], axis=2)        # [kt, L0, 2*L1]
    W1 = W1.reshape(kt * L0, 2 * L1)
    b1a = jnp.tile(params["b_t1"][:c1] + rb1, N)                   # [L1]
    b1b = jnp.tile(params["b_t1"][c1:], N)                         # [L1]

    # ---- slayer: fuse graph shift and grouped linear into one [L1, L1] operator ----
    L3 = params["Llist"].reshape(N, ks, N)                         # [n_in, k, n_out]
    Wg3 = params["w_g"].reshape(c1, c1, ks)                        # [c_out, c_in, k]
    Ms = jnp.einsum("akb,dck->acbd", L3, Wg3).reshape(L1, L1)
    bg = jnp.tile(params["b_g"], N)                                # [L1]

    # ---- tconv2 (ReLU): residual folded into last tap, taps flattened, cols zero-padded ----
    w2 = jnp.transpose(params["w_t2"][:, :, :, 0], (2, 1, 0))      # [kt, c1, c2]
    r3, rb3 = _residual_proj(c1, c2, params.get("lin_t2_w"), params.get("lin_t2_b"))
    w2 = w2.at[kt - 1].add(r3)
    W2 = _node_blockdiag(w2, N).reshape(kt * L1, L2)               # [kt*L1, L2]
    W2 = jnp.pad(W2, ((0, 0), (0, L2p - L2)))                      # zero cols -> 128-lane out
    b2 = jnp.tile(params["b_t2"] + rb3, N)                         # [L2]

    # ---- ln params in lane layout (node-major, channel-minor) ----
    gamma = jnp.transpose(params["gamma"][0, :, 0, :]).reshape(L2)
    beta = jnp.transpose(params["beta"][0, :, 0, :]).reshape(L2)

    # ---- pack all small per-lane vectors into ONE [8, VW] array (single prologue DMA) ----
    VW = max(L1, L2p)
    def _row(v):
        return jnp.pad(v.astype(f32), (0, VW - v.shape[0]))
    vecs = jnp.stack([_row(b1a), _row(b1b), _row(bg), _row(b2), _row(gamma), _row(beta),
                      jnp.zeros((VW,), f32), jnp.zeros((VW,), f32)])        # [8, VW]

    # ---- activations: NCHW -> [B, T, N*c0] (lane = n*c0 + c), host-side im2col over kt ----
    x_flat = jnp.transpose(x_nchw, (0, 2, 3, 1)).reshape(B, T, L0).astype(f32)

    nsteps = 2 if B >= 2 else 1          # keep >= 2 grid steps so both v7x TCs get work
    Bblk = -(-B // nsteps)
    Bpad = nsteps * Bblk
    if Bpad != B:
        x_flat = jnp.concatenate([x_flat, jnp.zeros((Bpad - B, T, L0), f32)], axis=0)
    x_im2col = jnp.concatenate([x_flat[:, dt:dt + T1, :] for dt in range(kt)], axis=-1)
    x_steps = x_im2col.reshape(nsteps, Bblk, T1, kt * L0).astype(bf16)

    kernel = functools.partial(_stblock_kernel, kt, Bblk, T2, L2)
    out_pad = pl.pallas_call(
        kernel,
        out_shape=jax.ShapeDtypeStruct((nsteps, Bblk * T2, L2p), f32),
        grid=(nsteps,),
        in_specs=[
            pl.BlockSpec((None, Bblk, T1, kt * L0), lambda s: (s, 0, 0, 0)),
            pl.BlockSpec((kt * L0, 2 * L1), lambda s: (0, 0)),
            pl.BlockSpec((L1, L1), lambda s: (0, 0)),
            pl.BlockSpec((kt * L1, L2p), lambda s: (0, 0)),
            pl.BlockSpec((8, VW), lambda s: (0, 0)),
        ],
        out_specs=pl.BlockSpec((None, Bblk * T2, L2p), lambda s: (s, 0, 0)),
        compiler_params=pltpu.CompilerParams(dimension_semantics=("parallel",)),
    )(x_steps, W1.astype(bf16), Ms.astype(bf16), W2.astype(bf16), vecs)

    out = out_pad.reshape(Bpad, T2, L2p)[:B, :, :L2]                     # strip batch/lane pad
    out_nchw = jnp.transpose(out.reshape(B, T2, N, c2), (0, 3, 1, 2))    # [B, c2, T2, N]
    F = jnp.mean(out_nchw, axis=(1, 2))                                  # F head in plain XLA
    return out_nchw, F


# --------------------------------------------------------------------------------------
# Pure-JAX reference of the PyTorch forward (NCHW), used only to validate the kernel.
# --------------------------------------------------------------------------------------
def reference_forward(x, params, *, kt, ks, channels):
    c0, c1, c2 = channels
    B, _, T, N = x.shape

    def resid(xx, cin, cout, lw=None, lb=None):
        if cin < cout:
            z = jnp.zeros((xx.shape[0], cout - cin, xx.shape[2], xx.shape[3]), xx.dtype)
            return jnp.concatenate([xx, z], axis=1)
        if cin == cout:
            return xx
        return jnp.einsum("oc,bctn->botn", lw[:, :, 0, 0], xx) + lb[None, :, None, None]

    def tconv(xx, W, b, kt_):
        To = xx.shape[2] - kt_ + 1
        y = b[None, :, None, None]
        for dt in range(kt_):
            y = y + jnp.einsum("oc,bctn->botn", W[:, :, dt, 0], xx[:, :, dt:dt + To, :])
        return y

    # tconv1 (GLU)
    xin = resid(x, c0, c1, params.get("lin_t1_w"), params.get("lin_t1_b"))[:, :, kt - 1:, :]
    y = tconv(x, params["w_t1"], params["b_t1"], kt)
    h1 = (y[:, :c1] + xin) * jax.nn.sigmoid(y[:, c1:])

    # slayer (cin == cout == c1)
    b_, c_, t_, n_ = h1.shape
    xtmp = (h1.reshape(-1, n_) @ params["Llist"]).reshape(b_, c_, t_, ks, n_)
    xtmp = jnp.transpose(xtmp, (0, 2, 4, 1, 3)).reshape(-1, c_ * ks)
    xtmp = (xtmp @ params["w_g"].T + params["b_g"]).reshape(b_, t_, n_, c1)
    xtmp = jnp.transpose(xtmp, (0, 3, 1, 2))
    h2 = jnp.maximum(xtmp + h1, 0.0)

    # tconv2 (ReLU)
    xin2 = resid(h2, c1, c2, params.get("lin_t2_w"), params.get("lin_t2_b"))[:, :, kt - 1:, :]
    y2 = tconv(h2, params["w_t2"], params["b_t2"], kt)
    h3 = jnp.maximum(y2 + xin2, 0.0)

    # ln (mean/unbiased-std over channel & node dims) + node-wise mean F
    mean = jnp.mean(h3, axis=(1, 3), keepdims=True)
    var = jnp.sum((h3 - mean) ** 2, axis=(1, 3), keepdims=True) / (c2 * N - 1)
    out = (h3 - mean) / (jnp.sqrt(var) + 1e-6) * params["gamma"] + params["beta"]
    F = jnp.mean(out, axis=(1, 2))
    return out, F


# --------------------------------------------------------------------------------------
if __name__ == "__main__":
    nodes, ks, kt = 16, 3, 3
    channels = (4, 8, 4)        # exercises zero-pad residual, identity residual, 1x1-conv residual
    B, T = 2, 12

    key = jax.random.PRNGKey(0)
    k_x, k_p = jax.random.split(key)
    x = jax.random.normal(k_x, (B, channels[0], T, nodes), jnp.float32)
    params = init_params(k_p, nodes, ks, kt, channels)

    out, F = stblock_pallas(x, params, kt=kt, ks=ks, channels=channels)
    out = jax.block_until_ready(out)
    F = jax.block_until_ready(F)

    T2 = T - 2 * (kt - 1)
    assert out.shape == (B, channels[2], T2, nodes), out.shape
    assert F.shape == (B, nodes), F.shape

    # Kernel uses bf16 MXU operands with f32 accumulation; compare against the f32
    # reference with a bf16-appropriate tolerance.
    out_ref, F_ref = reference_forward(x, params, kt=kt, ks=ks, channels=channels)
    np.testing.assert_allclose(np.asarray(out), np.asarray(out_ref), rtol=5e-2, atol=5e-2)
    np.testing.assert_allclose(np.asarray(F), np.asarray(F_ref), rtol=5e-2, atol=5e-2)

    print("KERNEL_OK")
</pallas_src>

<mosaic_0001>
module attributes {stable_mosaic.version = 11 : i64} {
  func.func @_stblock_kernel(%arg0: i32, %arg1: memref<1x1x10x192xbf16, #tpu.memory_space<vmem>>, %arg2: memref<192x256xbf16, #tpu.memory_space<vmem>>, %arg3: memref<128x128xbf16, #tpu.memory_space<vmem>>, %arg4: memref<384x128xbf16, #tpu.memory_space<vmem>>, %arg5: memref<8x128xf32, #tpu.memory_space<vmem>>, %arg6: memref<1x8x128xf32, #tpu.memory_space<vmem>>) attributes {dimension_semantics = [#tpu.dimension_semantics<parallel>], iteration_bounds = array<i64: 2>, scalar_prefetch = 0 : i64, scratch_operands = 0 : i64, tpu.core_type = #tpu.core_type<tc>, window_params = [{transform_indices = @transform_0, window_bounds = array<i64: 1, 1, 10, 192>}, {pipeline_mode = #tpu.pipeline_mode<synchronous>, transform_indices = @transform_1, window_bounds = array<i64: 192, 256>}, {pipeline_mode = #tpu.pipeline_mode<synchronous>, transform_indices = @transform_2, window_bounds = array<i64: 128, 128>}, {pipeline_mode = #tpu.pipeline_mode<synchronous>, transform_indices = @transform_3, window_bounds = array<i64: 384, 128>}, {pipeline_mode = #tpu.pipeline_mode<synchronous>, transform_indices = @transform_4, window_bounds = array<i64: 8, 128>}, {transform_indices = @transform_5, window_bounds = array<i64: 1, 8, 128>}]} {
    %c0 = arith.constant 0 : index
    %c0_0 = arith.constant 0 : index
    %0 = vector.load %arg5[%c0, %c0_0] : memref<8x128xf32, #tpu.memory_space<vmem>>, vector<1x128xf32>
    %c1 = arith.constant 1 : index
    %c0_1 = arith.constant 0 : index
    %1 = vector.load %arg5[%c1, %c0_1] : memref<8x128xf32, #tpu.memory_space<vmem>>, vector<1x128xf32>
    %c2 = arith.constant 2 : index
    %c0_2 = arith.constant 0 : index
    %2 = vector.load %arg5[%c2, %c0_2] : memref<8x128xf32, #tpu.memory_space<vmem>>, vector<1x128xf32>
    %c3 = arith.constant 3 : index
    %c0_3 = arith.constant 0 : index
    %3 = vector.load %arg5[%c3, %c0_3] : memref<8x128xf32, #tpu.memory_space<vmem>>, vector<1x128xf32>
    %c4 = arith.constant 4 : index
    %c0_4 = arith.constant 0 : index
    %4 = vector.load %arg5[%c4, %c0_4] : memref<8x128xf32, #tpu.memory_space<vmem>>, vector<1x128xf32>
    %c5 = arith.constant 5 : index
    %c0_5 = arith.constant 0 : index
    %5 = vector.load %arg5[%c5, %c0_5] : memref<8x128xf32, #tpu.memory_space<vmem>>, vector<1x128xf32>
    %c0_6 = arith.constant 0 : index
    %c0_7 = arith.constant 0 : index
    %c0_8 = arith.constant 0 : index
    %c0_9 = arith.constant 0 : index
    %6 = vector.load %arg1[%c0_6, %c0_7, %c0_8, %c0_9] : memref<1x1x10x192xbf16, #tpu.memory_space<vmem>>, vector<1x1x10x192xbf16>
    %7 = vector.shape_cast %6 : vector<1x1x10x192xbf16> to vector<10x192xbf16>
    %c0_10 = arith.constant 0 : index
    %c0_11 = arith.constant 0 : index
    %8 = vector.load %arg2[%c0_10, %c0_11] : memref<192x256xbf16, #tpu.memory_space<vmem>>, vector<192x256xbf16>
    %cst = arith.constant dense<0.000000e+00> : vector<10x256xf32>
    %9 = tpu.matmul %7, %8, %cst {dimension_numbers = #tpu.dot_dimension_numbers<[1], [0], [0], [1], [0, 0, 1, 1], [], []>} : vector<10x192xbf16>, vector<192x256xbf16>, vector<10x256xf32> -> vector<10x256xf32>
    %10 = vector.extract_strided_slice %9 {offsets = [0, 0], sizes = [10, 128], strides = [1, 1]} : vector<10x256xf32> to vector<10x128xf32>
    %11 = vector.broadcast %0 : vector<1x128xf32> to vector<10x128xf32>
    %12 = arith.addf %10, %11 : vector<10x128xf32>
    %13 = vector.extract_strided_slice %9 {offsets = [0, 128], sizes = [10, 128], strides = [1, 1]} : vector<10x256xf32> to vector<10x128xf32>
    %14 = vector.broadcast %1 : vector<1x128xf32> to vector<10x128xf32>
    %15 = arith.addf %13, %14 : vector<10x128xf32>
    %cst_12 = arith.constant 5.000000e-01 : f32
    %16 = vector.broadcast %cst_12 : f32 to vector<10x128xf32>
    %17 = arith.mulf %16, %15 : vector<10x128xf32>
    %18 = math.tanh %17 : vector<10x128xf32>
    %cst_13 = arith.constant 1.000000e+00 : f32
    %19 = vector.broadcast %cst_13 : f32 to vector<10x128xf32>
    %20 = arith.addf %18, %19 : vector<10x128xf32>
    %cst_14 = arith.constant 5.000000e-01 : f32
    %21 = vector.broadcast %cst_14 : f32 to vector<10x128xf32>
    %22 = arith.mulf %21, %20 : vector<10x128xf32>
    %23 = arith.mulf %12, %22 : vector<10x128xf32>
    %24 = arith.truncf %23 : vector<10x128xf32> to vector<10x128xbf16>
    %c0_15 = arith.constant 0 : index
    %c0_16 = arith.constant 0 : index
    %25 = vector.load %arg3[%c0_15, %c0_16] : memref<128x128xbf16, #tpu.memory_space<vmem>>, vector<128x128xbf16>
    %cst_17 = arith.constant dense<0.000000e+00> : vector<10x128xf32>
    %26 = tpu.matmul %24, %25, %cst_17 {dimension_numbers = #tpu.dot_dimension_numbers<[1], [0], [0], [1], [0, 0, 1, 1], [], []>} : vector<10x128xbf16>, vector<128x128xbf16>, vector<10x128xf32> -> vector<10x128xf32>
    %27 = vector.broadcast %2 : vector<1x128xf32> to vector<10x128xf32>
    %28 = arith.addf %26, %27 : vector<10x128xf32>
    %29 = arith.addf %28, %23 : vector<10x128xf32>
    %cst_18 = arith.constant 0.000000e+00 : f32
    %30 = vector.broadcast %cst_18 : f32 to vector<10x128xf32>
    %31 = arith.maximumf %29, %30 : vector<10x128xf32>
    %32 = vector.extract_strided_slice %31 {offsets = [0, 0], sizes = [8, 128], strides = [1, 1]} : vector<10x128xf32> to vector<8x128xf32>
    %33 = vector.extract_strided_slice %31 {offsets = [1, 0], sizes = [8, 128], strides = [1, 1]} : vector<10x128xf32> to vector<8x128xf32>
    %34 = vector.extract_strided_slice %31 {offsets = [2, 0], sizes = [8, 128], strides = [1, 1]} : vector<10x128xf32> to vector<8x128xf32>
    %35 = tpu.concatenate %32, %33, %34 in 1 : vector<8x128xf32>, vector<8x128xf32>, vector<8x128xf32> -> vector<8x384xf32>
    %36 = arith.truncf %35 : vector<8x384xf32> to vector<8x384xbf16>
    %c0_19 = arith.constant 0 : index
    %c0_20 = arith.constant 0 : index
    %37 = vector.load %arg4[%c0_19, %c0_20] : memref<384x128xbf16, #tpu.memory_space<vmem>>, vector<384x128xbf16>
    %cst_21 = arith.constant dense<0.000000e+00> : vector<8x128xf32>
    %38 = tpu.matmul %36, %37, %cst_21 {dimension_numbers = #tpu.dot_dimension_numbers<[1], [0], [0], [1], [0, 0, 1, 1], [], []>} : vector<8x384xbf16>, vector<384x128xbf16>, vector<8x128xf32> -> vector<8x128xf32>
    %39 = vector.broadcast %3 : vector<1x128xf32> to vector<8x128xf32>
    %40 = arith.addf %38, %39 : vector<8x128xf32>
    %cst_22 = arith.constant 0.000000e+00 : f32
    %41 = vector.broadcast %cst_22 : f32 to vector<8x128xf32>
    %42 = arith.maximumf %40, %41 : vector<8x128xf32>
    %cst_23 = arith.constant dense<0.000000e+00> : vector<8xf32>
    %43 = vector.multi_reduction <add>, %42, %cst_23 [1] : vector<8x128xf32> to vector<8xf32>
    %44 = vector.shape_cast %43 : vector<8xf32> to vector<8x1xf32>
    %cst_24 = arith.constant 1.562500e-02 : f32
    %45 = vector.broadcast %cst_24 : f32 to vector<8x1xf32>
    %46 = arith.mulf %44, %45 : vector<8x1xf32>
    %47 = arith.mulf %42, %42 : vector<8x128xf32>
    %cst_25 = arith.constant dense<0.000000e+00> : vector<8xf32>
    %48 = vector.multi_reduction <add>, %47, %cst_25 [1] : vector<8x128xf32> to vector<8xf32>
    %49 = vector.shape_cast %48 : vector<8xf32> to vector<8x1xf32>
    %cst_26 = arith.constant 6.400000e+01 : f32
    %50 = vector.broadcast %cst_26 : f32 to vector<8x1xf32>
    %51 = arith.mulf %50, %46 : vector<8x1xf32>
    %52 = arith.mulf %51, %46 : vector<8x1xf32>
    %53 = arith.subf %49, %52 : vector<8x1xf32>
    %cst_27 = arith.constant 0.000000e+00 : f32
    %54 = vector.broadcast %cst_27 : f32 to vector<8x1xf32>
    %55 = arith.maximumf %53, %54 : vector<8x1xf32>
    %cst_28 = arith.constant 0.0158730168 : f32
    %56 = vector.broadcast %cst_28 : f32 to vector<8x1xf32>
    %57 = arith.mulf %55, %56 : vector<8x1xf32>
    %58 = math.sqrt %57 : vector<8x1xf32>
    %cst_29 = arith.constant 9.99999997E-7 : f32
    %59 = vector.broadcast %cst_29 : f32 to vector<8x1xf32>
    %60 = arith.addf %58, %59 : vector<8x1xf32>
    %61 = tpu.reciprocal %60 {approx = true} : vector<8x1xf32> -> vector<8x1xf32>
    %62 = vector.broadcast %46 : vector<8x1xf32> to vector<8x128xf32>
    %63 = arith.subf %42, %62 : vector<8x128xf32>
    %64 = vector.broadcast %61 : vector<8x1xf32> to vector<8x128xf32>
    %65 = arith.mulf %63, %64 : vector<8x128xf32>
    %66 = vector.broadcast %4 : vector<1x128xf32> to vector<8x128xf32>
    %67 = arith.mulf %65, %66 : vector<8x128xf32>
    %68 = vector.broadcast %5 : vector<1x128xf32> to vector<8x128xf32>
    %69 = arith.addf %67, %68 : vector<8x128xf32>
    %c0_30 = arith.constant 0 : index
    %c0_31 = arith.constant 0 : index
    %c0_32 = arith.constant 0 : index
    %70 = vector.load %arg6[%c0_30, %c0_31, %c0_32] : memref<1x8x128xf32, #tpu.memory_space<vmem>>, vector<1x8x128xf32>
    %71 = vector.shape_cast %70 : vector<1x8x128xf32> to vector<8x128xf32>
    %72 = vector.shape_cast %69 : vector<8x128xf32> to vector<1x8x128xf32>
    tpu.vector_store %arg6[%c0_30, %c0_31, %c0_32], %72 {strides = array<i32>} : memref<1x8x128xf32, #tpu.memory_space<vmem>>, vector<1x8x128xf32>,
    return
  }
  func.func @transform_0(%arg0: i32) -> (i32, i32, i32, i32) {
    %c0_i32 = arith.constant 0 : i32
    %c0_i32_0 = arith.constant 0 : i32
    %c0_i32_1 = arith.constant 0 : i32
    %c0_i32_2 = arith.constant 0 : i32
    return %arg0, %c0_i32, %c0_i32_0, %c0_i32_1 : i32, i32, i32, i32
  }
  func.func @transform_1(%arg0: i32) -> (i32, i32) {
    %c0_i32 = arith.constant 0 : i32
    %c0_i32_0 = arith.constant 0 : i32
    %c0_i32_1 = arith.constant 0 : i32
    return %c0_i32, %c0_i32_0 : i32, i32
  }
  func.func @transform_2(%arg0: i32) -> (i32, i32) {
    %c0_i32 = arith.constant 0 : i32
    %c0_i32_0 = arith.constant 0 : i32
    %c0_i32_1 = arith.constant 0 : i32
    return %c0_i32, %c0_i32_0 : i32, i32
  }
  func.func @transform_3(%arg0: i32) -> (i32, i32) {
    %c0_i32 = arith.constant 0 : i32
    %c0_i32_0 = arith.constant 0 : i32
    %c0_i32_1 = arith.constant 0 : i32
    return %c0_i32, %c0_i32_0 : i32, i32
  }
  func.func @transform_4(%arg0: i32) -> (i32, i32) {
    %c0_i32 = arith.constant 0 : i32
    %c0_i32_0 = arith.constant 0 : i32
    %c0_i32_1 = arith.constant 0 : i32
    return %c0_i32, %c0_i32_0 : i32, i32
  }
  func.func @transform_5(%arg0: i32) -> (i32, i32, i32) {
    %c0_i32 = arith.constant 0 : i32
    %c0_i32_0 = arith.constant 0 : i32
    %c0_i32_1 = arith.constant 0 : i32
    return %arg0, %c0_i32, %c0_i32_0 : i32, i32, i32
  }
}

</mosaic_0001>

<bundles_post_ra>
// kernel: tpu_custom_call.1
= control target key start
LH: loop header
LB: loop body
LE: loop exit
PB: predicated region body
PF: predicated region fallthrough
CT: control target
= control target key end

     0   :  { %s1791_s0 = inlined_call_operand.vmem [shape: bf16[2,1,10,192], index: 0, kind: input, shape index: {}]   ;;  %s1792_s1 = inlined_call_operand.hbm [shape: bf16[192,256], index: 1, kind: input, shape index: {}]   ;;  %s1793_s2 = inlined_call_operand.hbm [shape: bf16[128,128], index: 2, kind: input, shape index: {}]   ;;  %s1794_s3 = inlined_call_operand.hbm [shape: bf16[384,128], index: 3, kind: input, shape index: {}]   ;;  %s1795_s4 = inlined_call_operand.vmem [shape: f32[8,128], index: 4, kind: input, shape index: {}]   ;;  %s1796_s5 = inlined_call_operand.hbm [shape: f32[2,8,128], index: 5, kind: output, shape index: {}]  }
   0x1   :  { %1802 = sst [smem:[#allocation12_spill]] %s1793_s2 }
   0x2   :  { %10 = vsyncpa [#allocation3], 0 }
   0x3   :  { %11 = vsyncpa [#allocation6], 0 }
   0x4   :  { %12 = vsyncpa [#allocation4], 0 }
   0x5   :  { %14 = vsyncpa [#allocation4 + $0x1], 0  ;;  %s1555_s18 = smov 0   ;;  %s1557_s19 = smov 0  }
   0x6   :  { %s1559_s20 = smov 0   ;;  %s1561_s21 = smov 0  }
   0x7 LB: > { %s1576_s22 = sadd.s32 4294967295, %s1513_s21   ;;  %s1041_s23 = sadd.s32 4294967294, %s1513_s21   ;;  %s1513_s21 = sphi %s1561_s21, %s1821_s21   ;;  %s1509_s20 = sphi %s1559_s20, %s1820_s20   ;;  %s1505_s19 = sphi %s1557_s19, %s1819_s19   ;;  %s1501_s18 = sphi %s1555_s18, %s1818_s18  }
   0x8   : > { %s1580_s24 = sadd.s32 1, %s1513_s21   ;;  %s137_s25 = sadd.s32 1, %s1509_s20 }
   0x9   : > { %s134_s26 = ssub.s32 %s1513_s21, %s1580_s24  ;;  %p147_p0 = scmp.ne.s32.totalorder %s1509_s20, %s1505_s19 }
   0xa   : > { %p135_p1 = scmp.eq.s32.totalorder %s134_s26, 0  ;;  %p148_p2 = scmp.eq.s32.totalorder %s1576_s22, 1 }
   0xb   : > { %p153_p3 = scmp.ne.s32.totalorder %s1505_s19, %s1501_s18  ;;  %p154_p4 = scmp.eq.s32.totalorder %s1041_s23, 1 }
   0xc   : > { %s1591_s27 = scalar_select %p135_p1, %s1509_s20, %s137_s25  }
   0xd   : > { %p1593_p5 = por %p148_p2, %p147_p0  ;;  %p1597_p6 = por %p154_p4, %p153_p3 }
   0xe   : > { %p1042_p7 = scmp.ge.s32.totalorder %s1513_s21, 1  ;;  %p161_p8 = scmp.lt.s32.totalorder %s1513_s21, 3 }
   0xf   : > { %s1803_s28 = scalar_select %p1593_p5, 1, 0 }
  0x10   : > { %s1804_s29 = scalar_select %p1597_p6, 1, 0 }
  0x11   : > { %p1797_p9 = scmp.eq.s32.totalorder %s1576_s22, 0  ;;  %p1604_p10 = pnand %p1042_p7, %p161_p8 }
  0x12   : > { %s1515_s6 = smov [#allocation5]   ;;  %s1516_s9 = smov [#allocation2]  }
  0x13   : > { %s1805_s30 = scalar_select %p1604_p10, 1, 0 }
  0x14   : > { %s186_s7 = sshll.u32 %s1515_s6, 4  ;;  %p1218_p11 = pneg %p1604_p10  ;;  %s187_s7 = int_to_ptr.vmem [resolvable:$true] %s186_s7 }
  0x15   : > { %s173_s10 = sshll.u32 %s1516_s9, 4  ;;  %s1807_s2 = sld [smem:[#allocation12_spill]]  ;;  %s1616_s10 = int_to_ptr.vmem [resolvable:$true] %s173_s10 }
  0x16   : > { %p1612_p12 = pnand %p1797_p9, %p1218_p11 }
  0x18   : > { %p1626_p0 = pneg %p1612_p12 }
  0x1b   : > { %s1359_s13 = scalar_lea.hbm %s1807_s2, 1024 }
  0x1c   : > { %p1360_p13 = scmp.ne.s32.totalorder %s1807_s2, %s1359_s13  ;;  %p1366_p3 = scmp.lt.u32.totalorder %s1359_s13, %s1807_s2 }
  0x1e   : > { %p1362_p1 = pnand %p1626_p0, %p1360_p13 }
  0x20   : > { %p1363_p2 = pneg %p1362_p1 }
  0x22   : > { %p1368_p4 = pnand %p1366_p3, %p1363_p2 }
  0x24   : > { %1371 = shalt.err (!%p1368_p4)
}
  0x25   : > { %s1372_s25 = scalar_lea.vmem %s187_s7, 1024  ;;  %p1380_p9 = scmp.lt.s32.totalorder %s187_s7, %s187_s7 }
  0x26   : > { %p1373_p7 = scmp.ne.s32.totalorder %s187_s7, %s1372_s25  ;;  %p1381_p6 = scmp.lt.s32.totalorder %s1372_s25, %s1372_s25 }
  0x28   : > { %p1375_p8 = pnand %p1373_p7, %p1626_p0  ;;  %p1382_p5 = por %p1381_p6, %p1380_p9 }
  0x2a   : > { %p1376_p11 = pneg %p1375_p8 }
  0x2c   : > { %p1383_p10 = pnand %p1382_p5, %p1376_p11 }
  0x2e   : > { %1386 = shalt.err (!%p1383_p10)
}
  0x2f   : > { %s1800_s26 = smov 64   ;;  %s1801_s6 = smov 4  }
  0x30   : > { %1224 = dma.hbm_to_vmem [thread:$0]  (!%p1612_p12), %s1807_s2, 1024, %s187_s7, [#allocation6], %s1800_s26, %s1800_s26, %s1801_s6  }
  0x31   : > { %s1387_s14 = scalar_lea.hbm %s1792_s1, 3072 }
  0x32   : > { %p1388_p5 = scmp.ne.s32.totalorder %s1792_s1, %s1387_s14  ;;  %p1394_p10 = scmp.lt.u32.totalorder %s1387_s14, %s1792_s1 }
  0x34   : > { %p1390_p6 = pnand %p1388_p5, %p1626_p0 }
  0x36   : > { %p1391_p9 = pneg %p1390_p6 }
  0x38   : > { %p1396_p13 = pnand %p1394_p10, %p1391_p9 }
  0x3a   : > { %1399 = shalt.err (!%p1396_p13)
}
  0x3b   : > { %s1400_s7 = scalar_lea.vmem %s1616_s10, 3072  ;;  %p1408_p4 = scmp.lt.s32.totalorder %s1616_s10, %s1616_s10 }
  0x3c   : > { %p1401_p1 = scmp.ne.s32.totalorder %s1616_s10, %s1400_s7  ;;  %p1409_p7 = scmp.lt.s32.totalorder %s1400_s7, %s1400_s7 }
  0x3e   : > { %p1403_p2 = pnand %p1401_p1, %p1626_p0  ;;  %p1410_p8 = por %p1409_p7, %p1408_p4 }
  0x40   : > { %p1404_p3 = pneg %p1403_p2 }
  0x42   : > { %p1411_p11 = pnand %p1410_p8, %p1404_p3 }
  0x44   : > { %1414 = shalt.err (!%p1411_p11)
}
  0x45   : > { %s1519_s9 = smov 128   ;;  %s1520_s11 = smov 8  }
  0x46   : > { %1221 = dma.hbm_to_vmem [thread:$0]  (!%p1612_p12), %s1792_s1, 3072, %s1616_s10, [#allocation3], %s1519_s9, %s1519_s9, %s1520_s11  }
  0x47   : > { %s1521_s14 = smov [#allocation7]   ;;  %s1415_s25 = scalar_lea.hbm %s1794_s3, 3072 }
  0x48   : > { %s199_s15 = sshll.u32 %s1521_s14, 4  ;;  %p1416_p5 = scmp.ne.s32.totalorder %s1794_s3, %s1415_s25  ;;  %s200_s15 = int_to_ptr.vmem [resolvable:$true] %s199_s15 }
  0x49   : > { %p1422_p10 = scmp.lt.u32.totalorder %s1415_s25, %s1794_s3 }
  0x4a   : > { %p1418_p6 = pnand %p1416_p5, %p1626_p0 }
  0x4c   : > { %p1419_p9 = pneg %p1418_p6 }
  0x4e   : > { %p1424_p13 = pnand %p1422_p10, %p1419_p9 }
  0x50   : > { %1427 = shalt.err (!%p1424_p13)
}
  0x51   : > { %s1428_s10 = scalar_lea.vmem %s200_s15, 3072  ;;  %p1436_p4 = scmp.lt.s32.totalorder %s200_s15, %s200_s15 }
  0x52   : > { %p1429_p1 = scmp.ne.s32.totalorder %s200_s15, %s1428_s10  ;;  %p1437_p7 = scmp.lt.s32.totalorder %s1428_s10, %s1428_s10 }
  0x54   : > { %p1431_p2 = pnand %p1429_p1, %p1626_p0  ;;  %p1438_p8 = por %p1437_p7, %p1436_p4 }
  0x56   : > { %p1432_p3 = pneg %p1431_p2 }
  0x58   : > { %p1439_p11 = pnand %p1438_p8, %p1432_p3 }
  0x5a   : > { %1442 = shalt.err (!%p1439_p11)
}
  0x5b   : > { %s1809_s26 = smov 4   ;;  %s1810_s9 = smov 64  }
  0x5c   : > { %1227 = dma.hbm_to_vmem [thread:$0]  (!%p1612_p12), %s1794_s3, 3072, %s200_s15, [#allocation6], %s1810_s9, %s1810_s9, %s1809_s26  }
  0x5d   : > { %p1811_p5 = scmp.ne.s32.totalorder %s1805_s30, 0 }
  0x5e   : > { %p1812_p0 = scmp.eq.s32.totalorder (!%p1811_p5), %s1576_s22, 0 }
  0x5f   : > { %226 = sbr.rel (%p1811_p5) target bundleno = 1042 (0x412), region = 40 }
  0x66   : > { %1488 = dma.done.wait (%p1812_p0), [#allocation3], 3072   ;;  %p1813_p6 = pmov %p1812_p0 }
  0x67   : > { %p1814_p9 = pmov %p1812_p0 }
  0x68   : > { %1490 = vsyncadd (%p1813_p6), [#allocation3], 4294964224 }
  0x69   : > { %1492 = dma.done.wait (%p1814_p9), [#allocation6], 4096   ;;  %p1815_p10 = pmov %p1812_p0 }
  0x6a   : > { %v1522_v0 = vmov 0.0   ;;  %v1280_v1 = vld [vmem:[#allocation2 + $0x4] ss:$8 sps:$4 sm:$0xff]   ;;  %v1282_v2 = vld [vmem:[#allocation2] ss:$8 sps:$4 sm:$0xff]   ;;  %p262_p12 = scmp.lt.s32.totalorder %s1576_s22, 1 }
  0x6b   : > { %1494 = vsyncadd (%p1815_p10), [#allocation6], 4294963200  ;;  %1164 = vmatprep.subr.bf16.mxu1 %v1522_v0  ;;  %433 = vmatprep.subr.bf16.mxu0 %v1280_v1  ;;  %v1283_v3 = vld [vmem:[#allocation2 + $0x14] ss:$8 sps:$4 sm:$0xff]   ;;  %v1285_v4 = vld [vmem:[#allocation2 + $0x10] ss:$8 sps:$4 sm:$0xff]  }
  0x6c   : > { %434 = vmatpush1.bf16.msra.mxu0 %v1282_v2  ;;  %v1286_v5 = vld [vmem:[#allocation2 + $0x24] ss:$8 sps:$4 sm:$0xff]   ;;  %v1288_v6 = vld [vmem:[#allocation2 + $0x20] ss:$8 sps:$4 sm:$0xff]   ;;  %s263_s30 = scalar_select %p262_p12, %s1576_s22, 1  ;;  %vm429_vm0 = vcmask 523264  }
  0x6d   : > { %435 = vmatprep.subr.bf16.mxu0 %v1283_v3  ;;  %v1289_v7 = vld [vmem:[#allocation2 + $0x34] ss:$8 sps:$4 sm:$0xff]   ;;  %v1291_v8 = vld [vmem:[#allocation2 + $0x30] ss:$8 sps:$4 sm:$0xff]   ;;  %v1292_v9 = vld [vmem:[#allocation2 + $0x44] ss:$8 sps:$4 sm:$0xff]  }
  0x6e   : > { %s1123_s8 = sshll.u32 %s263_s30, 4  ;;  %v1294_v10 = vld [vmem:[#allocation2 + $0x40] ss:$8 sps:$4 sm:$0xff]   ;;  %v1295_v11 = vld [vmem:[#allocation2 + $0x54] ss:$8 sps:$4 sm:$0xff]   ;;  %vm1523_vm1 = vmmov 0  }
  0x6f   : > { %s1705_s12 = scalar_lea.vmem %s1791_s0, %s1123_s8  ;;  %v1297_v12 = vld [vmem:[#allocation2 + $0x50] ss:$8 sps:$4 sm:$0xff]   ;;  %v1319_v14 = vld [vmem:[#allocation5] sm:$0xff]   ;;  %v1301_v17 = vld [vmem:[#allocation2 + $0x74] ss:$8 sps:$4 sm:$0xff]   ;;  %1180 = vmatprep.mubr.msk.bf16.mxu1 %vm1523_vm1, %v1522_v0  ;;  %vm614_vm2 = vcmask 1046528  }
  0x70   : > { %436 = vmatpush1.bf16.msra.mxu0 %v1285_v4  ;;  %v1318_v13 = vld [vmem:[%s1705_s12 + $0x4] ss:$8 sps:$4 sm:$0x1f]   ;;  %1165 = vmatpush3.bf16.msra.mxu1 %v1319_v14  ;;  %v1300_v16 = vld [vmem:[#allocation2 + $0x60] ss:$8 sps:$4 sm:$0xff]   ;;  %v1321_v29 = vld [vmem:[#allocation5 + $0x10] sm:$0xff]  }
  0x71   : > { %437 = vmatprep.subr.bf16.mxu0 %v1286_v5  ;;  %v1298_v15 = vld [vmem:[#allocation2 + $0x64] ss:$8 sps:$4 sm:$0xff]   ;;  %1080 = vmatprep.mubr.msk.bf16.mxu0 %vm429_vm0, %v1318_v13  ;;  %v1303_v18 = vld [vmem:[#allocation2 + $0x70] ss:$8 sps:$4 sm:$0xff]   ;;  %v1306_v20 = vld [vmem:[#allocation2 + $0x80] ss:$8 sps:$4 sm:$0xff]  }
  0x72   : > { %1166 = vmatprep.subr.bf16.mxu1 %v1522_v0  ;;  %v1304_v19 = vld [vmem:[#allocation2 + $0x84] ss:$8 sps:$4 sm:$0xff]   ;;  %v1307_v21 = vld [vmem:[#allocation2 + $0x94] ss:$8 sps:$4 sm:$0xff]   ;;  %v1309_v22 = vld [vmem:[#allocation2 + $0x90] ss:$8 sps:$4 sm:$0xff]  }
  0x73   : > { %v1310_v23 = vld [vmem:[#allocation2 + $0xa4] ss:$8 sps:$4 sm:$0xff]   ;;  %v1312_v24 = vld [vmem:[#allocation2 + $0xa0] ss:$8 sps:$4 sm:$0xff]   ;;  %v1313_v25 = vld [vmem:[#allocation2 + $0xb4] ss:$8 sps:$4 sm:$0xff]  }
  0x74   : > { %438 = vmatpush1.bf16.msra.mxu0 %v1288_v6  ;;  %v1315_v26 = vld [vmem:[#allocation2 + $0xb0] ss:$8 sps:$4 sm:$0xff]   ;;  %v1316_v27 = vld [vmem:[%s1705_s12] ss:$8 sps:$4 sm:$0x1f]   ;;  %vm619_vm3 = vcmask 1045504  }
  0x75   : > { %439 = vmatprep.subr.bf16.mxu0 %v1289_v7  ;;  %v1320_v28 = vld [vmem:[#allocation5 + $0x8] sm:$0xff]   ;;  %v1322_v30 = vld [vmem:[#allocation5 + $0x18] sm:$0xff]   ;;  %v1323_v31 = vld [vmem:[#allocation5 + $0x20] sm:$0xff]   ;;  %s259_s26 = sand.u32 1, %s1505_s19   ;;  %s1120_s16 = sshll.u32 %s1576_s22, 7 }
  0x76   : > { %1167 = vmatpush3.bf16.msra.mxu1 %v1320_v28  ;;  %v1324_v32 = vld [vmem:[#allocation5 + $0x28] sm:$0xff]   ;;  %v1325_v33 = vld [vmem:[#allocation5 + $0x30] sm:$0xff]   ;;  %v1326_v34 = vld [vmem:[#allocation5 + $0x38] sm:$0xff]   ;;  %s1051_s9 = sshll.u32 %s259_s26, 3  ;;  %s1749_s15 = scalar_lea.hbm %s1796_s5, %s1120_s16 }
  0x77   : > { %1168 = vmatprep.subr.bf16.mxu1 %v1522_v0  ;;  %v1327_v35 = vld [vmem:[#allocation7 + $0x40] sm:$0xff]   ;;  %v1331_v37 = vld [vmem:[#allocation7 + $0x88] sm:$0xff]   ;;  %v1334_v38 = vld [vmem:[#allocation7 + $0x90] sm:$0xff]   ;;  %s261_s11 = scalar_lea.vmem [#allocation8], %s1051_s9  ;;  %s938_s17 = scalar_lea.sflag [#allocation4], %s259_s26 }
  0x78   : > { %440 = vmatpush1.bf16.msra.mxu0 %v1291_v8  ;;  %v1328_v36 = vld [vmem:[#allocation7 + $0x80] sm:$0xff]   ;;  %v1337_v39 = vld [vmem:[#allocation7 + $0x98] sm:$0xff]   ;;  %v1330_v63 = vld [vmem:[#allocation7 + $0x48] sm:$0xff]   ;;  %s951_s12 = sshll.u32 %s261_s11, 4  ;;  %p1816_p1 = scmp.ne.s32.totalorder %s1803_s28, 0  ;;  %s1751_s12 = int_to_ptr.vmem [resolvable:$true] %s951_s12 }
  0x79   : > { %441 = vmatprep.subr.bf16.mxu0 %v1292_v9  ;;  %v1340_v40 = vld [vmem:[#allocation7 + $0xa0] sm:$0xff]   ;;  %v1332_v1 = vld [vmem:[#allocation7 + $0x8] sm:$0xff]   ;;  %v1333_v2 = vld [vmem:[#allocation7 + $0x50] sm:$0xff]   ;;  %s1443_s23 = scalar_lea.vmem %s1751_s12, 128  ;;  %s1524_s22 = smov [#allocation8]  }
  0x7a   : > { %1169 = vmatpush3.bf16.msra.mxu1 %v1321_v29  ;;  %v1082_v41 = vld [vmem:[%s1795_s4 + $0x1] ss:$0 sm:$0xff]  ;;  %v1081_v51 = vld [vmem:[%s1795_s4] ss:$0 sm:$0xff]  ;;  %v1335_v3 = vld [vmem:[#allocation7 + $0x10] sm:$0xff]   ;;  %p1444_p13 = scmp.ne.s32.totalorder %s1751_s12, %s1443_s23  ;;  %s1447_s25 = sshll.u32 %s1524_s22, 4  ;;  %s1448_s25 = int_to_ptr.vmem [resolvable:$false] %s1447_s25 }
  0x7b   : > { %1170 = vmatprep.subr.bf16.mxu1 %v1522_v0  ;;  %v1329_v61 = vld [vmem:[#allocation7] sm:$0xff]   ;;  %v1336_v4 = vld [vmem:[#allocation7 + $0x58] sm:$0xff]   ;;  %v1342_v8 = vld [vmem:[#allocation7 + $0x68] sm:$0xff]   ;;  %s1449_s7 = scalar_lea.vmem %s1448_s25, 256  ;;  %p1450_p4 = scmp.lt.s32.totalorder %s1751_s12, %s1448_s25 }
  0x7c   : > { %442 = vmatpush1.bf16.msra.mxu0 %v1294_v10  ;;  %v1338_v5 = vld [vmem:[#allocation7 + $0x18] sm:$0xff]   ;;  %v1339_v6 = vld [vmem:[#allocation7 + $0x60] sm:$0xff]   ;;  %v1343_v9 = vld [vmem:[#allocation7 + $0xa8] sm:$0xff]   ;;  %p1445_p2 = pnand %p1444_p13, %p1816_p1  ;;  %p1451_p7 = scmp.lt.s32.totalorder %s1449_s7, %s1443_s23 }
  0x7d   : > { %443 = vmatprep.subr.bf16.mxu0 %v1295_v11  ;;  %v1341_v7 = vld [vmem:[#allocation7 + $0x20] sm:$0xff]   ;;  %v1344_v10 = vld [vmem:[#allocation7 + $0x28] sm:$0xff]   ;;  %v1345_v11 = vld [vmem:[#allocation7 + $0x70] sm:$0xff]  }
  0x7e   : > { %1171 = vmatpush3.bf16.msra.mxu1 %v1322_v30  ;;  %v1347_v13 = vld [vmem:[#allocation7 + $0x30] sm:$0xff]   ;;  %v1348_v14 = vld [vmem:[#allocation7 + $0x78] sm:$0xff]   ;;  %p1446_p3 = pneg %p1445_p2  ;;  %p1452_p8 = por %p1451_p7, %p1450_p4 }
  0x7f   : > { %1172 = vmatprep.subr.bf16.mxu1 %v1522_v0 }
  0x80   : > { %444 = vmatpush1.bf16.msra.mxu0 %v1297_v12  ;;  %v1346_v12 = vld [vmem:[#allocation7 + $0xb0] sm:$0xff]   ;;  %p1453_p11 = pnand %p1452_p8, %p1446_p3 }
  0x81   : > { %445 = vmatprep.subr.bf16.mxu0 %v1298_v15  ;;  %v1349_v15 = vld [vmem:[#allocation7 + $0xb8] sm:$0xff]  }
  0x82   : > { %1173 = vmatpush3.bf16.msra.mxu1 %v1323_v31 }
  0x83   : > { %1174 = vmatprep.subr.bf16.mxu1 %v1522_v0 }
  0x84   : > { %446 = vmatpush1.bf16.msra.mxu0 %v1300_v16  ;;  %v1350_v16 = vld [vmem:[#allocation7 + $0x38] sm:$0xff]  }
  0x85   : > { %447 = vmatprep.subr.bf16.mxu0 %v1301_v17  ;;  %v1083_v17 = vld [vmem:[%s1795_s4 + $0x2] ss:$0 sm:$0xff] }
  0x86   : > { %1175 = vmatpush3.bf16.msra.mxu1 %v1324_v32 }
  0x87   : > { %1176 = vmatprep.subr.bf16.mxu1 %v1522_v0 }
  0x88   : > { %448 = vmatpush1.bf16.msra.mxu0 %v1303_v18 }
  0x89   : > { %449 = vmatprep.subr.bf16.mxu0 %v1304_v19 }
  0x8a   : > { %1177 = vmatpush3.bf16.msra.mxu1 %v1325_v33 }
  0x8b   : > { %1178 = vmatprep.subr.bf16.mxu1 %v1522_v0 }
  0x8c   : > { %450 = vmatpush1.bf16.msra.mxu0 %v1306_v20 }
  0x8d   : > { %451 = vmatprep.subr.bf16.mxu0 %v1307_v21 }
  0x8e   : > { %1179 = vmatpush3.bf16.msra.mxu1 %v1326_v34 }
  0x8f   : > { %1133 = vmatprep.subr.bf16.mxu1 %v1327_v35 }
  0x90   : > { %452 = vmatpush1.bf16.msra.mxu0 %v1309_v22 }
  0x91   : > { %453 = vmatprep.subr.bf16.mxu0 %v1310_v23 }
  0x94   : > { %454 = vmatpush1.bf16.msra.mxu0 %v1312_v24 }
  0x95   : > { %455 = vmatprep.subr.bf16.mxu0 %v1313_v25 }
  0x98   : > { %456 = vmatpush1.bf16.msra.mxu0 %v1315_v26 }
  0x99   : > { %1184 = vmatprep.subr.bf16.mxu0 %v1522_v0 }
  0x9b   : > { %466 = vmatmul.mubr.bf16.vlgmr.msra.gmra.mrb[0].mxu0 %v1316_v27 }
  0x9c   : > { %1200 = vmatprep.mubr.msk.bf16.mxu0 %vm1523_vm1, %v1522_v0  ;;  %1185 = vmatpush3.bf16.msra.mxu0 %v1328_v36 }
  0x9d   : > { %1186 = vmatprep.subr.bf16.mxu0 %v1522_v0 }
  0xa0   : > { %1187 = vmatpush3.bf16.msra.mxu0 %v1331_v37 }
  0xa1   : > { %1188 = vmatprep.subr.bf16.mxu0 %v1522_v0 }
  0xa4   : > { %1189 = vmatpush3.bf16.msra.mxu0 %v1334_v38 }
  0xa5   : > { %1190 = vmatprep.subr.bf16.mxu0 %v1522_v0 }
  0xa8   : > { %1191 = vmatpush3.bf16.msra.mxu0 %v1337_v39  ;;  %v1092_v39 = vld [vmem:[%s1795_s4 + $0x3] ss:$0 sm:$0xff] }
  0xa9   : > { %1192 = vmatprep.subr.bf16.mxu0 %v1522_v0 }
  0xac   : > { %1193 = vmatpush3.bf16.msra.mxu0 %v1340_v40 }
  0xad   : > { %1194 = vmatprep.subr.bf16.mxu0 %v1522_v0 }
  0xb0   : > { %1195 = vmatpush3.bf16.msra.mxu0 %v1343_v9 }
  0xb1   : > { %1196 = vmatprep.subr.bf16.mxu0 %v1522_v0 }
  0xb4   : > { %1197 = vmatpush3.bf16.msra.mxu0 %v1346_v12 }
  0xb5   : > { %1198 = vmatprep.subr.bf16.mxu0 %v1522_v0 }
  0xb8   : > { %1199 = vmatpush3.bf16.msra.mxu0 %v1349_v15 }
 0x16e   : > { %v467_v42 = vpop.f32.mrb[0].mxu0 }
 0x16f   : > { %v469_v43 = vpop.f32.mrb[1].mxu0  ;;  %v480_v54 = vadd.f32 %v1081_v51, %v467_v42 }
 0x170   : > { %v486_v44 = vadd.f32 %v1082_v41, %v469_v43  ;;  %v471_v45 = vpop.f32.mrb[2].mxu0 }
 0x171   : > { %v473_v46 = vpop.f32.mrb[3].mxu0  ;;  %v481_v57 = vadd.f32 %v1081_v51, %v471_v45 }
 0x172   : > { %v488_v47 = vmul.f32 0.5, %v486_v44  ;;  %v487_v48 = vadd.f32 %v1082_v41, %v473_v46 }
 0x174   : > { %1351 = vtanh.f32 %v488_v47  ;;  %v489_v49 = vmul.f32 0.5, %v487_v48 }
 0x176   : > { %1353 = vtanh.f32 %v489_v49 }
 0x17e   : > { %v1352_v50 = vpop.eup %1351 }
 0x17f   : > { %v492_v52 = vadd.f32 1.0, %v1352_v50 }
 0x180   : > { %v1354_v53 = vpop.eup %1353 }
 0x181   : > { %v494_v55 = vmul.f32 0.5, %v492_v52  ;;  %v493_v56 = vadd.f32 1.0, %v1354_v53 }
 0x183   : > { %v495_v58 = vmul.f32 0.5, %v493_v56  ;;  %v496_v59 = vmul.f32 %v494_v55, %v480_v54 }
 0x185   : > { %v497_v60 = vmul.f32 %v495_v58, %v481_v57 }
 0x187   : > { %v498_v62 = vpack.c.bf16 %v497_v60, %v496_v59 }
 0x189   : > { %1181 = vmatmul.mubr.bf16.vlgmr.msra.gmra.mrb[0].mxu1 %v498_v62 }
 0x18a   : > { %1134 = vmatpush3.bf16.msra.mxu1 %v1329_v61 }
 0x18b   : > { %1135 = vmatprep.subr.bf16.mxu1 %v1330_v63 }
 0x18e   : > { %1136 = vmatpush3.bf16.msra.mxu1 %v1332_v1 }
 0x18f   : > { %1137 = vmatprep.subr.bf16.mxu1 %v1333_v2 }
 0x192   : > { %1138 = vmatpush3.bf16.msra.mxu1 %v1335_v3  ;;  %v1117_v3 = vld [vmem:[%s1795_s4 + $0x4] ss:$0 sm:$0xff] }
 0x193   : > { %1139 = vmatprep.subr.bf16.mxu1 %v1336_v4 }
 0x196   : > { %1140 = vmatpush3.bf16.msra.mxu1 %v1338_v5  ;;  %v1118_v5 = vld [vmem:[%s1795_s4 + $0x5] ss:$0 sm:$0xff] }
 0x197   : > { %1141 = vmatprep.subr.bf16.mxu1 %v1339_v6 }
 0x19a   : > { %1142 = vmatpush3.bf16.msra.mxu1 %v1341_v7 }
 0x19b   : > { %1143 = vmatprep.subr.bf16.mxu1 %v1342_v8 }
 0x19e   : > { %1144 = vmatpush3.bf16.msra.mxu1 %v1344_v10 }
 0x19f   : > { %1145 = vmatprep.subr.bf16.mxu1 %v1345_v11 }
 0x1a2   : > { %1146 = vmatpush3.bf16.msra.mxu1 %v1347_v13 }
 0x1a3   : > { %1147 = vmatprep.subr.bf16.mxu1 %v1348_v14 }
 0x1a6   : > { %1148 = vmatpush3.bf16.msra.mxu1 %v1350_v16 }
 0x25c   : > { %v601_v18 = vpop.f32.mrb[0].mxu1 }
 0x25d   : > { %v602_v19 = vadd.f32 %v1083_v17, %v601_v18  ;;  %v1182_v20 = vpop.f32.mrb[1].mxu1 }
 0x25e   : > { %v604_v21 = vpop.f32.mrb[2].mxu1 }
 0x25f   : > { %v608_v22 = vadd.f32 %v602_v19, %v496_v59  ;;  %v605_v23 = vadd.f32 %v1083_v17, %v604_v21  ;;  %v1183_v24 = vpop.f32.mrb[3].mxu1 }
 0x261   : > { %v610_v25 = vmax.f32 %v608_v22, 0.0  ;;  %v609_v26 = vadd.f32 %v605_v23, %v497_v60 }
 0x263   : > { %v611_v0 = vmax.f32 %v609_v26, 0.0  ;;  %v615_v27 = vrot.slane %v610_v25, 1  ;;  %v620_v28 = vrot.slane %v610_v25, 2  ;;  %v624_v35 = vpack.c.bf16 %v610_v25, %v610_v25 }
 0x265   : > { %v616_v29 = vrot.slane %v611_v0, 1  ;;  %v621_v30 = vrot.slane %v611_v0, 2 }
 0x267   : > { %v617_v31 = vsel %vm614_vm2, %v615_v27, %v616_v29  ;;  %v622_v32 = vsel %vm619_vm3, %v620_v28, %v621_v30 }
 0x268   : > { %v625_v33 = vpack.c.bf16 %v617_v31, %v617_v31  ;;  %v626_v34 = vpack.c.bf16 %v622_v32, %v622_v32 }
 0x26a   : > { %855 = vmatprep.mubr.bf16.mxu1 %v625_v33  ;;  %1201 = vmatmul.mubr.bf16.vlgmr.msra.gmra.mrb[4].mxu0 %v626_v34 }
 0x26b   : > { %856 = vmatmul.mubr.bf16.vlgmr.msra.gmra.mrb[4].mxu1 %v624_v35 }
 0x33d   : > { %v897_v36 = vpop.f32.mrb[4].mxu0 }
 0x33e   : > { %v1149_v37 = vpop.f32.mrb[4].mxu1  ;;  %v1202_v38 = vpop.f32.mrb[5].mxu0 }
 0x33f   : > { %v1150_v40 = vpop.f32.mrb[5].mxu1  ;;  %v900_v41 = vpop.f32.mrb[6].mxu0 }
 0x340   : > { %v1151_v42 = vadd.f32 %v1150_v40, %v1149_v37  ;;  %v1152_v43 = vpop.f32.mrb[6].mxu1  ;;  %v1203_v44 = vpop.f32.mrb[7].mxu0 }
 0x341   : > { %v1153_v45 = vpop.f32.mrb[7].mxu1 }
 0x342   : > { %v858_v46 = vadd.f32 %v1151_v42, %v1092_v39 }
 0x344   : > { %v898_v47 = vadd.f32 %v897_v36, %v858_v46 }
 0x346   : > { %v903_v48 = vmax.f32 %v898_v47, 0.0 }
 0x348   : > { %904 = vadd.xlane.f32.xlu0 %v903_v48  ;;  %v907_v49 = vmul.f32 %v903_v48, %v903_v48 }
 0x34c   : > { %908 = vadd.xlane.f32.xlu0 %v907_v49 }
 0x3d5   : > { %v905_v50 = vpop.xlane.xlu0 %904 }
 0x3d6   : > { %v906_v51 = vmul.f32 0.015625, %v905_v50 }
 0x3d8   : > { %v910_v52 = vmul.f32 64.0, %v906_v51  ;;  %v924_v1 = vsub.f32 %v903_v48, %v906_v51 }
 0x3d9   : > { %v909_v54 = vpop.xlane.xlu0 %908 }
 0x3da   : > { %v911_v53 = vmul.f32 %v910_v52, %v906_v51 }
 0x3dc   : > { %v912_v55 = vsub.f32 %v909_v54, %v911_v53 }
 0x3de   : > { %v913_v56 = vmax.f32 %v912_v55, 0.0 }
 0x3e0   : > { %v914_v57 = vmul.f32 0.015873017, %v913_v56 }
 0x3e2   : > { %1355 = vrsqrt.f32 %v914_v57  ;;  %vm917_vm4 = vcmp.eq.f32.partialorder %v914_v57, inf  ;;  %v920_v60 = vand.u32 2147483648, %v914_v57  ;;  %vm919_vm5 = vcmp.eq.f32.partialorder %v914_v57, 0.0 }
 0x3ec   : > { %v1356_v58 = vpop.eup %1355 }
 0x3ed   : > { %v916_v59 = vmul.f32 %v1356_v58, %v914_v57 }
 0x3ef   : > { %v918_v61 = vsel %vm917_vm4, %v914_v57, %v916_v59 }
 0x3f0   : > { %v921_v62 = vsel %vm919_vm5, %v920_v60, %v918_v61 }
 0x3f1   : > { %v922_v63 = vadd.f32 1e-06, %v921_v62 }
 0x3f3   : > { %1357 = vrcp.f32 %v922_v63 }
 0x3fd   : > { %v1358_v2 = vpop.eup %1357 }
 0x3fe   : > { %v925_v4 = vmul.f32 %v1358_v2, %v924_v1 }
 0x400   : > { %v930_v6 = vmul.f32 %v1117_v3, %v925_v4 }
 0x402   : > { %v935_v7 = vadd.f32 %v1118_v5, %v930_v6 }
 0x404   : > { %936 = vst [vmem:[%s261_s11] sm:$0xff] %v935_v7 }
 0x405   : > { %1456 = shalt.err (!%p1453_p11)
}
 0x406   : > { %s1457_s10 = scalar_lea.hbm %s1749_s15, 128  ;;  %s1461_s2 = scalar_lea.hbm %s1796_s5, 256 }
 0x407   : > { %p1458_p5 = scmp.ne.s32.totalorder %s1749_s15, %s1457_s10  ;;  %p1462_p9 = scmp.lt.u32.totalorder %s1749_s15, %s1796_s5 }
 0x408   : > { %p1463_p10 = scmp.lt.u32.totalorder %s1461_s2, %s1457_s10  ;;  %p1465_p13 = scmp.lt.u32.totalorder %s1457_s10, %s1749_s15 }
 0x409   : > { %p1459_p0 = pnand %p1458_p5, %p1816_p1 }
 0x40a   : > { %p1464_p12 = por %p1463_p10, %p1462_p9 }
 0x40b   : > { %p1460_p6 = pneg %p1459_p0 }
 0x40c   : > { %p1466_p2 = por %p1465_p13, %p1464_p12 }
 0x40e   : > { %p1467_p3 = pnand %p1466_p2, %p1460_p6 }
 0x410   : > { %1470 = shalt.err (!%p1467_p3)
}
 0x411   : > { %1216 = dma.vmem_to_hbm [thread:$0]  (%p1816_p1), %s1751_s12, 128, %s1749_s15, %s938_s17  }
 0x412 PF: > { %p1238_p4 = scmp.ge.s32.totalorder %s1513_s21, 2  ;;  %s963_s8 = sand.u32 1, %s1501_s18  }
 0x413   : > { %p1817_p7 = scmp.ne.s32.totalorder %s1804_s29, 0  ;;  %s964_s16 = scalar_lea.sflag [#allocation4], %s963_s8 }
 0x415   : > { %p1229_p8 = pnand %p1238_p4, %p1817_p7 }
 0x417   : > { %1496 = dma.done.wait (!%p1229_p8), %s964_s16, 128  }
 0x418   : > { %1498 = vsyncadd (!%p1229_p8), %s964_s16, 4294967168  ;;  %p17_p11 = scmp.ge.s32.totalorder %s1580_s24, 4   ;;  %s1818_s18 = smov %s1505_s19 }
 0x419   : > { %s1819_s19 = smov %s1509_s20  ;;  %s1820_s20 = smov %s1591_s27 }
 0x41a   : > { %s1821_s21 = smov %s1580_s24  ;;  %19 = sbr.rel (!%p17_p11) target bundleno = 7 (0x7), region = 88 }
 0x421   :  { %969 = vsyncpa [#allocation3], 1 }
 0x422   :  { %971 = vsyncpa [#allocation3 + $0x1], 1 }
 0x423   :  { %972 = vsyncpa [#allocation6], 1 }
 0x424   :  { %973 = vsyncpa [#allocation4], 1 }
 0x425   :  { %975 = vsyncpa [#allocation4 + $0x1], 1 }

</bundles_post_ra>
